<compile_context>
chip_gen: v7x
topology: tpu7x:2x2x1
jax: 0.10.0
libtpu: 0.0.40
codegen_flags: <defaults>
</compile_context>

<pallas_src>
import math

import jax
import jax.numpy as jnp
from jax import lax
from jax.experimental import pallas as pl
from jax.experimental.pallas import tpu as pltpu


# ------------------------------- kernel ------------------------------------ #

def plasma_fused_kernel(time_ref,
                        v_flat_ref, v_last_ref, z_flat_ref, z_last_ref, s_sum_ref,
                        w_enc_ref, b_enc_ref, w_ah_ref, b_ah_ref,
                        w_fin_ref, b_fin_ref, rho_ref,
                        z_out_ref, h_out_ref):
    """Fused PlasmaModel forward.

    time_ref   : (1,)        f32  SMEM scalar
    v_flat_ref : (N*T, D)    flattened raw V (for BN batch statistics)
    v_last_ref : (N, D)      V[:, T-1, :]
    z_flat_ref : (N*T, H)    flattened Z
    z_last_ref : (N, H)      Z[:, T-2, :]
    s_sum_ref  : (N, N*T)    0/1 segment-sum matrix (sum over t < T-1 per n)
    w_enc_ref  : (D, H), b_enc_ref: (1, H)
    w_ah_ref   : (H, 2H) = [W_ah | Wg_ah], b_ah_ref: (1, 2H)
    w_fin_ref  : (3, H, 4H) block weights, cols = [W_muz | W_az | Wg_muz | Wg_az]
                 row 0 multiplies z_last, row 1 multiplies enc(V)_last,
                 row 2 multiplies H_final.
    b_fin_ref  : (1, 4H)
    rho_ref    : (1, H)      TDM parameter
    outputs    : Z_next (N, H), H_next (N, H)
    """
    H = rho_ref.shape[1]

    # -------- Encoder_V (UnitCoder): Linear -> BatchNorm1d(batch stats) -> Tanh
    h_enc = jnp.dot(v_flat_ref[...], w_enc_ref[...],
                    preferred_element_type=jnp.float32) + b_enc_ref[...]
    mean = jnp.mean(h_enc, axis=0, keepdims=True)
    var = jnp.mean((h_enc - mean) ** 2, axis=0, keepdims=True)   # biased, like torch BN
    inv_std = lax.rsqrt(var + 1e-5)
    # Only the t = T-1 rows of encoded V feed the final pred_z; normalize just those.
    h_enc_last = jnp.dot(v_last_ref[...], w_enc_ref[...],
                         preferred_element_type=jnp.float32) + b_enc_ref[...]
    v_enc_last = jnp.tanh((h_enc_last - mean) * inv_std)          # (N, H)
    # TODO(synk): BatchNorm running-stat updates (training side effect) and the
    # affine gamma/beta (identity at module init) are not tracked.

    # -------- Hoisted recurrence: H_final = sum_{t<T-1} GLU_ah(Z_t, Z_t)
    ah = jnp.dot(z_flat_ref[...], w_ah_ref[...],
                 preferred_element_type=jnp.float32) + b_ah_ref[...]   # (N*T, 2H)
    g_ah = ah[:, :H] * jax.nn.sigmoid(ah[:, H:])                       # (N*T, H)
    h_final = jnp.dot(s_sum_ref[...], g_ah,
                      preferred_element_type=jnp.float32)              # (N, H)
    h_out_ref[...] = h_final

    # -------- Final pred_z (computed exactly once), lane-dense (N, 4H) output
    out = (jnp.dot(z_last_ref[...], w_fin_ref[0], preferred_element_type=jnp.float32)
           + jnp.dot(v_enc_last, w_fin_ref[1], preferred_element_type=jnp.float32)
           + jnp.dot(h_final, w_fin_ref[2], preferred_element_type=jnp.float32)
           + b_fin_ref[...])                                           # (N, 4H)
    a_mu = out[:, 0:H]          # z_last @ W_muz  + b_muz
    a_az = out[:, H:2 * H]      # v_enc  @ W_az   + b_az
    g_mu = out[:, 2 * H:3 * H]  # H      @ Wg_muz + bg_muz
    g_az = out[:, 3 * H:4 * H]  # H      @ Wg_az  + bg_az
    decay = jnp.exp(-time_ref[0] / (rho_ref[...] + 1e-10))             # TDM, (1, H)
    z_out_ref[...] = (decay * a_mu * jax.nn.sigmoid(g_mu)
                      + a_az * jax.nn.sigmoid(g_az))


# ------------------------------ wrappers ------------------------------------ #

def xavier_uniform(key, fan_in, fan_out):
    bound = math.sqrt(6.0 / (fan_in + fan_out))
    # Returned already transposed to (in, out).
    return jax.random.uniform(key, (fan_in, fan_out), jnp.float32, -bound, bound)


def init_params(hidden, num_variable, key):
    keys = jax.random.split(key, 7)
    W_ah = xavier_uniform(keys[0], hidden, hidden)
    Wg_ah = xavier_uniform(keys[1], hidden, hidden)
    W_muz = xavier_uniform(keys[2], hidden, hidden)
    Wg_muz = xavier_uniform(keys[3], hidden, hidden)
    W_az = xavier_uniform(keys[4], hidden, hidden)
    Wg_az = xavier_uniform(keys[5], hidden, hidden)
    w_enc = xavier_uniform(keys[6], num_variable, hidden)

    H = hidden
    # GLU_ah weights concatenated for a single lane-dense (H, 2H) matmul.
    w_ah = jnp.concatenate([W_ah, Wg_ah], axis=1)                # (H, 2H)
    b_ah = jnp.zeros((1, 2 * H), jnp.float32)                    # init.constant_(bias, 0)

    # Block-structured final-step weights (3, H, 4H): one accumulated matmul
    # produces [W_muz(z_last) | W_az(v_enc) | Wg_muz(H) | Wg_az(H)] side by side.
    w_fin = jnp.zeros((3, H, 4 * H), jnp.float32)
    w_fin = w_fin.at[0, :, 0:H].set(W_muz)        # LHS: z_last
    w_fin = w_fin.at[1, :, H:2 * H].set(W_az)     # LHS: encoded V_last
    w_fin = w_fin.at[2, :, 2 * H:3 * H].set(Wg_muz)   # LHS: H_final
    w_fin = w_fin.at[2, :, 3 * H:4 * H].set(Wg_az)    # LHS: H_final
    b_fin = jnp.zeros((1, 4 * H), jnp.float32)

    b_enc = jnp.zeros((1, H), jnp.float32)
    rho = jnp.ones((1, H), jnp.float32)                          # TDM rho

    return dict(w_ah=w_ah, b_ah=b_ah, w_fin=w_fin, b_fin=b_fin,
                w_enc=w_enc, b_enc=b_enc, rho=rho,
                # raw mats kept only for the pure-JAX reference check
                raw=dict(W_ah=W_ah, Wg_ah=Wg_ah, W_muz=W_muz, Wg_muz=Wg_muz,
                         W_az=W_az, Wg_az=Wg_az))


def plasma_forward(params, Z, V, time):
    """Z: (N, T, H), V: (N, T, num_variable), time: python float scalar."""
    N, T, H = Z.shape
    D = V.shape[-1]
    assert T >= 2, "PlasmaModel sequence mode requires T >= 2 (original code "\
                   "leaves Z_next undefined for T == 1)."

    # Free row-major reshapes / tiny slices -- no transposes, no HBM relayout.
    z_flat = Z.reshape(N * T, H).astype(jnp.float32)
    v_flat = V.reshape(N * T, D).astype(jnp.float32)
    z_last = Z[:, T - 2, :].astype(jnp.float32)
    v_last = V[:, T - 1, :].astype(jnp.float32)

    # Segment-sum matrix: h_final[n] = sum_{t < T-1} GLU_ah(Z[n, t]).
    row = jnp.arange(N * T)
    s_sum = ((row[None, :] // T == jnp.arange(N)[:, None])
             & ((row[None, :] % T) < (T - 1))).astype(jnp.float32)   # (N, N*T)

    time_arr = jnp.asarray([time], jnp.float32)                      # SMEM scalar

    z_next, h_next = pl.pallas_call(
        plasma_fused_kernel,
        out_shape=(jax.ShapeDtypeStruct((N, H), jnp.float32),
                   jax.ShapeDtypeStruct((N, H), jnp.float32)),
        in_specs=[pl.BlockSpec(memory_space=pltpu.MemorySpace.SMEM)]
                 + [pl.BlockSpec(memory_space=pltpu.MemorySpace.VMEM)] * 12,
        out_specs=(pl.BlockSpec(memory_space=pltpu.MemorySpace.VMEM),
                   pl.BlockSpec(memory_space=pltpu.MemorySpace.VMEM)),
    )(time_arr, v_flat, v_last, z_flat, z_last, s_sum,
      params["w_enc"], params["b_enc"], params["w_ah"], params["b_ah"],
      params["w_fin"], params["b_fin"], params["rho"])
    return z_next, h_next


# --------------------------- pure-JAX reference ----------------------------- #

def plasma_reference(params, Z, V, time):
    """Direct port of the PyTorch loop (the original T-1 step recurrence)."""
    N, T, H = Z.shape
    x = V.reshape(-1, V.shape[-1]) @ params["w_enc"] + params["b_enc"]
    mean = x.mean(0, keepdims=True)
    var = ((x - mean) ** 2).mean(0, keepdims=True)
    Venc = jnp.tanh((x - mean) / jnp.sqrt(var + 1e-5)).reshape(N, T, H)

    r = params["raw"]

    def glu_f(a, b, W, Wg):
        return (a @ W) * jax.nn.sigmoid(b @ Wg)

    h = jnp.zeros((N, H), jnp.float32)
    decay = jnp.exp(-time / (params["rho"] + 1e-10))
    z_next = None
    for t in range(T - 1):
        h = glu_f(Z[:, t], Z[:, t], r["W_ah"], r["Wg_ah"]) + h
        z_next = (decay * glu_f(Z[:, t], h, r["W_muz"], r["Wg_muz"])
                  + glu_f(Venc[:, t + 1], h, r["W_az"], r["Wg_az"]))
    return z_next, h


# --------------------------------- main ------------------------------------- #

if __name__ == "__main__":
    N, T = 8, 6
    hidden_dimension, num_variable = 32, 16
    time_scalar = 0.5

    key = jax.random.PRNGKey(0)
    k_param, k_z, k_v = jax.random.split(key, 3)

    params = init_params(hidden_dimension, num_variable, k_param)
    Z = jax.random.normal(k_z, (N, T, hidden_dimension), jnp.float32)
    V = jax.random.normal(k_v, (N, T, num_variable), jnp.float32)

    z_next, h_next = plasma_forward(params, Z, V, time_scalar)
    jax.block_until_ready((z_next, h_next))

    z_ref, h_ref = plasma_reference(params, Z, V, time_scalar)
    assert z_next.shape == (N, hidden_dimension)
    assert h_next.shape == (N, hidden_dimension)
    assert jnp.allclose(z_next, z_ref, rtol=1e-2, atol=1e-2), \
        float(jnp.max(jnp.abs(z_next - z_ref)))
    assert jnp.allclose(h_next, h_ref, rtol=1e-2, atol=1e-2), \
        float(jnp.max(jnp.abs(h_next - h_ref)))

    print("KERNEL_OK")
</pallas_src>

<mosaic_0001>
module attributes {stable_mosaic.version = 11 : i64} {
  func.func @plasma_fused_kernel(%arg0: memref<1xf32, #tpu.memory_space<smem>>, %arg1: memref<48x16xf32, #tpu.memory_space<vmem>>, %arg2: memref<8x16xf32, #tpu.memory_space<vmem>>, %arg3: memref<48x32xf32, #tpu.memory_space<vmem>>, %arg4: memref<8x32xf32, #tpu.memory_space<vmem>>, %arg5: memref<8x48xf32, #tpu.memory_space<vmem>>, %arg6: memref<16x32xf32, #tpu.memory_space<vmem>>, %arg7: memref<1x32xf32, #tpu.memory_space<vmem>>, %arg8: memref<32x64xf32, #tpu.memory_space<vmem>>, %arg9: memref<1x64xf32, #tpu.memory_space<vmem>>, %arg10: memref<3x32x128xf32, #tpu.memory_space<vmem>>, %arg11: memref<1x128xf32, #tpu.memory_space<vmem>>, %arg12: memref<1x32xf32, #tpu.memory_space<vmem>>, %arg13: memref<8x32xf32, #tpu.memory_space<vmem>>, %arg14: memref<8x32xf32, #tpu.memory_space<vmem>>) attributes {dimension_semantics = [], scalar_prefetch = 0 : i64, scratch_operands = 0 : i64, tpu.core_type = #tpu.core_type<tc>} {
    %c0 = arith.constant 0 : index
    %c0_0 = arith.constant 0 : index
    %0 = vector.load %arg1[%c0, %c0_0] : memref<48x16xf32, #tpu.memory_space<vmem>>, vector<48x16xf32>
    %c0_1 = arith.constant 0 : index
    %c0_2 = arith.constant 0 : index
    %1 = vector.load %arg6[%c0_1, %c0_2] : memref<16x32xf32, #tpu.memory_space<vmem>>, vector<16x32xf32>
    %cst = arith.constant dense<0.000000e+00> : vector<48x32xf32>
    %2 = tpu.matmul %0, %1, %cst {dimension_numbers = #tpu.dot_dimension_numbers<[1], [0], [0], [1], [0, 0, 1, 1], [], []>} : vector<48x16xf32>, vector<16x32xf32>, vector<48x32xf32> -> vector<48x32xf32>
    %c0_3 = arith.constant 0 : index
    %c0_4 = arith.constant 0 : index
    %3 = vector.load %arg7[%c0_3, %c0_4] : memref<1x32xf32, #tpu.memory_space<vmem>>, vector<1x32xf32>
    %4 = vector.broadcast %3 : vector<1x32xf32> to vector<48x32xf32>
    %5 = arith.addf %2, %4 : vector<48x32xf32>
    %cst_5 = arith.constant dense<0.000000e+00> : vector<32xf32>
    %6 = vector.multi_reduction <add>, %5, %cst_5 [0] : vector<48x32xf32> to vector<32xf32>
    %7 = vector.shape_cast %6 : vector<32xf32> to vector<1x32xf32>
    %cst_6 = arith.constant 4.800000e+01 : f32
    %8 = vector.broadcast %cst_6 : f32 to vector<1x32xf32>
    %9 = arith.divf %7, %8 : vector<1x32xf32>
    %10 = vector.broadcast %9 : vector<1x32xf32> to vector<48x32xf32>
    %11 = arith.subf %5, %10 : vector<48x32xf32>
    %12 = arith.mulf %11, %11 : vector<48x32xf32>
    %cst_7 = arith.constant dense<0.000000e+00> : vector<32xf32>
    %13 = vector.multi_reduction <add>, %12, %cst_7 [0] : vector<48x32xf32> to vector<32xf32>
    %14 = vector.shape_cast %13 : vector<32xf32> to vector<1x32xf32>
    %cst_8 = arith.constant 4.800000e+01 : f32
    %15 = vector.broadcast %cst_8 : f32 to vector<1x32xf32>
    %16 = arith.divf %14, %15 : vector<1x32xf32>
    %cst_9 = arith.constant 9.99999974E-6 : f32
    %17 = vector.broadcast %cst_9 : f32 to vector<1x32xf32>
    %18 = arith.addf %16, %17 : vector<1x32xf32>
    %19 = math.rsqrt %18 : vector<1x32xf32>
    %c0_10 = arith.constant 0 : index
    %c0_11 = arith.constant 0 : index
    %20 = vector.load %arg2[%c0_10, %c0_11] : memref<8x16xf32, #tpu.memory_space<vmem>>, vector<8x16xf32>
    %c0_12 = arith.constant 0 : index
    %c0_13 = arith.constant 0 : index
    %21 = vector.load %arg6[%c0_12, %c0_13] : memref<16x32xf32, #tpu.memory_space<vmem>>, vector<16x32xf32>
    %cst_14 = arith.constant dense<0.000000e+00> : vector<8x32xf32>
    %22 = tpu.matmul %20, %21, %cst_14 {dimension_numbers = #tpu.dot_dimension_numbers<[1], [0], [0], [1], [0, 0, 1, 1], [], []>} : vector<8x16xf32>, vector<16x32xf32>, vector<8x32xf32> -> vector<8x32xf32>
    %c0_15 = arith.constant 0 : index
    %c0_16 = arith.constant 0 : index
    %23 = vector.load %arg7[%c0_15, %c0_16] : memref<1x32xf32, #tpu.memory_space<vmem>>, vector<1x32xf32>
    %24 = vector.broadcast %23 : vector<1x32xf32> to vector<8x32xf32>
    %25 = arith.addf %22, %24 : vector<8x32xf32>
    %26 = vector.broadcast %9 : vector<1x32xf32> to vector<8x32xf32>
    %27 = arith.subf %25, %26 : vector<8x32xf32>
    %28 = vector.broadcast %19 : vector<1x32xf32> to vector<8x32xf32>
    %29 = arith.mulf %27, %28 : vector<8x32xf32>
    %30 = math.tanh %29 : vector<8x32xf32>
    %c0_17 = arith.constant 0 : index
    %c0_18 = arith.constant 0 : index
    %31 = vector.load %arg3[%c0_17, %c0_18] : memref<48x32xf32, #tpu.memory_space<vmem>>, vector<48x32xf32>
    %c0_19 = arith.constant 0 : index
    %c0_20 = arith.constant 0 : index
    %32 = vector.load %arg8[%c0_19, %c0_20] : memref<32x64xf32, #tpu.memory_space<vmem>>, vector<32x64xf32>
    %cst_21 = arith.constant dense<0.000000e+00> : vector<48x64xf32>
    %33 = tpu.matmul %31, %32, %cst_21 {dimension_numbers = #tpu.dot_dimension_numbers<[1], [0], [0], [1], [0, 0, 1, 1], [], []>} : vector<48x32xf32>, vector<32x64xf32>, vector<48x64xf32> -> vector<48x64xf32>
    %c0_22 = arith.constant 0 : index
    %c0_23 = arith.constant 0 : index
    %34 = vector.load %arg9[%c0_22, %c0_23] : memref<1x64xf32, #tpu.memory_space<vmem>>, vector<1x64xf32>
    %35 = vector.broadcast %34 : vector<1x64xf32> to vector<48x64xf32>
    %36 = arith.addf %33, %35 : vector<48x64xf32>
    %37 = vector.extract_strided_slice %36 {offsets = [0, 0], sizes = [48, 32], strides = [1, 1]} : vector<48x64xf32> to vector<48x32xf32>
    %38 = vector.extract_strided_slice %36 {offsets = [0, 32], sizes = [48, 32], strides = [1, 1]} : vector<48x64xf32> to vector<48x32xf32>
    %39 = arith.negf %38 : vector<48x32xf32>
    %40 = math.exp %39 : vector<48x32xf32>
    %cst_24 = arith.constant 1.000000e+00 : f32
    %41 = vector.broadcast %cst_24 : f32 to vector<48x32xf32>
    %42 = arith.addf %41, %40 : vector<48x32xf32>
    %43 = arith.divf %41, %42 : vector<48x32xf32>
    %44 = arith.mulf %37, %43 : vector<48x32xf32>
    %c0_25 = arith.constant 0 : index
    %c0_26 = arith.constant 0 : index
    %45 = vector.load %arg5[%c0_25, %c0_26] : memref<8x48xf32, #tpu.memory_space<vmem>>, vector<8x48xf32>
    %cst_27 = arith.constant dense<0.000000e+00> : vector<8x32xf32>
    %46 = tpu.matmul %45, %44, %cst_27 {dimension_numbers = #tpu.dot_dimension_numbers<[1], [0], [0], [1], [0, 0, 1, 1], [], []>} : vector<8x48xf32>, vector<48x32xf32>, vector<8x32xf32> -> vector<8x32xf32>
    %c0_28 = arith.constant 0 : index
    %c0_29 = arith.constant 0 : index
    %47 = vector.load %arg14[%c0_28, %c0_29] : memref<8x32xf32, #tpu.memory_space<vmem>>, vector<8x32xf32>
    tpu.vector_store %arg14[%c0_28, %c0_29], %46 {strides = array<i32>} : memref<8x32xf32, #tpu.memory_space<vmem>>, vector<8x32xf32>,
    %c0_30 = arith.constant 0 : index
    %c0_31 = arith.constant 0 : index
    %48 = vector.load %arg4[%c0_30, %c0_31] : memref<8x32xf32, #tpu.memory_space<vmem>>, vector<8x32xf32>
    %c0_32 = arith.constant 0 : index
    %c0_33 = arith.constant 0 : index
    %c0_34 = arith.constant 0 : index
    %49 = vector.load %arg10[%c0_32, %c0_33, %c0_34] : memref<3x32x128xf32, #tpu.memory_space<vmem>>, vector<1x32x128xf32>
    %50 = vector.shape_cast %49 : vector<1x32x128xf32> to vector<32x128xf32>
    %cst_35 = arith.constant dense<0.000000e+00> : vector<8x128xf32>
    %51 = tpu.matmul %48, %50, %cst_35 {dimension_numbers = #tpu.dot_dimension_numbers<[1], [0], [0], [1], [0, 0, 1, 1], [], []>} : vector<8x32xf32>, vector<32x128xf32>, vector<8x128xf32> -> vector<8x128xf32>
    %c1 = arith.constant 1 : index
    %c0_36 = arith.constant 0 : index
    %c0_37 = arith.constant 0 : index
    %52 = vector.load %arg10[%c1, %c0_36, %c0_37] : memref<3x32x128xf32, #tpu.memory_space<vmem>>, vector<1x32x128xf32>
    %53 = vector.shape_cast %52 : vector<1x32x128xf32> to vector<32x128xf32>
    %cst_38 = arith.constant dense<0.000000e+00> : vector<8x128xf32>
    %54 = tpu.matmul %30, %53, %cst_38 {dimension_numbers = #tpu.dot_dimension_numbers<[1], [0], [0], [1], [0, 0, 1, 1], [], []>} : vector<8x32xf32>, vector<32x128xf32>, vector<8x128xf32> -> vector<8x128xf32>
    %55 = arith.addf %51, %54 : vector<8x128xf32>
    %c2 = arith.constant 2 : index
    %c0_39 = arith.constant 0 : index
    %c0_40 = arith.constant 0 : index
    %56 = vector.load %arg10[%c2, %c0_39, %c0_40] : memref<3x32x128xf32, #tpu.memory_space<vmem>>, vector<1x32x128xf32>
    %57 = vector.shape_cast %56 : vector<1x32x128xf32> to vector<32x128xf32>
    %cst_41 = arith.constant dense<0.000000e+00> : vector<8x128xf32>
    %58 = tpu.matmul %46, %57, %cst_41 {dimension_numbers = #tpu.dot_dimension_numbers<[1], [0], [0], [1], [0, 0, 1, 1], [], []>} : vector<8x32xf32>, vector<32x128xf32>, vector<8x128xf32> -> vector<8x128xf32>
    %59 = arith.addf %55, %58 : vector<8x128xf32>
    %c0_42 = arith.constant 0 : index
    %c0_43 = arith.constant 0 : index
    %60 = vector.load %arg11[%c0_42, %c0_43] : memref<1x128xf32, #tpu.memory_space<vmem>>, vector<1x128xf32>
    %61 = vector.broadcast %60 : vector<1x128xf32> to vector<8x128xf32>
    %62 = arith.addf %59, %61 : vector<8x128xf32>
    %63 = vector.extract_strided_slice %62 {offsets = [0, 0], sizes = [8, 32], strides = [1, 1]} : vector<8x128xf32> to vector<8x32xf32>
    %64 = vector.extract_strided_slice %62 {offsets = [0, 32], sizes = [8, 32], strides = [1, 1]} : vector<8x128xf32> to vector<8x32xf32>
    %65 = vector.extract_strided_slice %62 {offsets = [0, 64], sizes = [8, 32], strides = [1, 1]} : vector<8x128xf32> to vector<8x32xf32>
    %66 = vector.extract_strided_slice %62 {offsets = [0, 96], sizes = [8, 32], strides = [1, 1]} : vector<8x128xf32> to vector<8x32xf32>
    %c0_44 = arith.constant 0 : index
    %67 = memref.load %arg0[%c0_44] : memref<1xf32, #tpu.memory_space<smem>>
    %cst_45 = arith.constant 0.000000e+00 : f32
    %68 = arith.subf %cst_45, %67 : f32
    %c0_46 = arith.constant 0 : index
    %c0_47 = arith.constant 0 : index
    %69 = vector.load %arg12[%c0_46, %c0_47] : memref<1x32xf32, #tpu.memory_space<vmem>>, vector<1x32xf32>
    %cst_48 = arith.constant 1.000000e-10 : f32
    %70 = vector.broadcast %cst_48 : f32 to vector<1x32xf32>
    %71 = arith.addf %69, %70 : vector<1x32xf32>
    %72 = vector.broadcast %68 : f32 to vector<1x32xf32>
    %73 = arith.divf %72, %71 : vector<1x32xf32>
    %74 = math.exp %73 : vector<1x32xf32>
    %75 = vector.broadcast %74 : vector<1x32xf32> to vector<8x32xf32>
    %76 = arith.mulf %75, %63 : vector<8x32xf32>
    %77 = arith.negf %65 : vector<8x32xf32>
    %78 = math.exp %77 : vector<8x32xf32>
    %cst_49 = arith.constant 1.000000e+00 : f32
    %79 = vector.broadcast %cst_49 : f32 to vector<8x32xf32>
    %80 = arith.addf %79, %78 : vector<8x32xf32>
    %81 = arith.divf %79, %80 : vector<8x32xf32>
    %82 = arith.mulf %76, %81 : vector<8x32xf32>
    %83 = arith.negf %66 : vector<8x32xf32>
    %84 = math.exp %83 : vector<8x32xf32>
    %cst_50 = arith.constant 1.000000e+00 : f32
    %85 = vector.broadcast %cst_50 : f32 to vector<8x32xf32>
    %86 = arith.addf %85, %84 : vector<8x32xf32>
    %87 = arith.divf %85, %86 : vector<8x32xf32>
    %88 = arith.mulf %64, %87 : vector<8x32xf32>
    %89 = arith.addf %82, %88 : vector<8x32xf32>
    %c0_51 = arith.constant 0 : index
    %c0_52 = arith.constant 0 : index
    %90 = vector.load %arg13[%c0_51, %c0_52] : memref<8x32xf32, #tpu.memory_space<vmem>>, vector<8x32xf32>
    tpu.vector_store %arg13[%c0_51, %c0_52], %89 {strides = array<i32>} : memref<8x32xf32, #tpu.memory_space<vmem>>, vector<8x32xf32>,
    return
  }
}

</mosaic_0001>

<bundles_post_ra>
// kernel: tpu_custom_call.1
= control target key start
LH: loop header
LB: loop body
LE: loop exit
PB: predicated region body
PF: predicated region fallthrough
CT: control target
= control target key end

     0   :  { %21 = vsyncpa [#allocation4], 0  ;;  %v1180_v3 = vmov 0.0|0.0   ;;  %vm1181_vm0 = vmmov 0   ;;  %v1182_v5 = vmov 0.0   ;;  %vm64_vm1 = vcmask 130048   ;;  %s1505_s0 = inlined_call_operand.<no memory space> [shape: f32[1], index: 0, kind: input, shape index: {}]   ;;  %s1506_s1 = inlined_call_operand.vmem [shape: f32[48,16], index: 1, kind: input, shape index: {}]   ;;  %s1507_s2 = inlined_call_operand.vmem [shape: f32[8,16], index: 2, kind: input, shape index: {}]   ;;  %s1508_s3 = inlined_call_operand.vmem [shape: f32[48,32], index: 3, kind: input, shape index: {}]   ;;  %s1509_s4 = inlined_call_operand.vmem [shape: f32[8,32], index: 4, kind: input, shape index: {}]   ;;  %s1510_s5 = inlined_call_operand.vmem [shape: f32[8,48], index: 5, kind: input, shape index: {}]   ;;  %s1511_s6 = inlined_call_operand.vmem [shape: f32[16,32], index: 6, kind: input, shape index: {}]   ;;  %s1512_s7 = inlined_call_operand.vmem [shape: f32[1,32], index: 7, kind: input, shape index: {}]   ;;  %s1513_s8 = inlined_call_operand.vmem [shape: f32[32,64], index: 8, kind: input, shape index: {}]   ;;  %s1514_s9 = inlined_call_operand.vmem [shape: f32[1,64], index: 9, kind: input, shape index: {}]   ;;  %s1515_s10 = inlined_call_operand.vmem [shape: f32[3,32,128], index: 10, kind: input, shape index: {}]   ;;  %s1516_s11 = inlined_call_operand.vmem [shape: f32[1,128], index: 11, kind: input, shape index: {}]   ;;  %s1517_s12 = inlined_call_operand.vmem [shape: f32[1,32], index: 12, kind: input, shape index: {}]   ;;  %s1518_s13 = inlined_call_operand.hbm [shape: f32[8,32], index: 13, kind: output, shape index: {0}]   ;;  %s1519_s14 = inlined_call_operand.hbm [shape: f32[8,32], index: 14, kind: output, shape index: {1}]  }
   0x1   :  { %v55_v0 = vld [vmem:[%s1511_s6] sm:$0xff]  ;;  %v56_v1 = vld [vmem:[%s1511_s6 + $0x8] sm:$0xff]  ;;  %1051 = vmatprep.subr.bf16.mxu1 %v1180_v3  ;;  %979 = vmatprep.mubr.msk.f32.mxu1 %vm1181_vm0, %v1182_v5  ;;  %v315_v9 = vld [vmem:[%s1513_s8 + $0x10] sm:$0xff]  ;;  %vm178_vm2 = vcmask 261120  }
   0x2   :  { %v49_v2 = vld [vmem:[%s1506_s1] sm:$0xff]  ;;  %v1047_v4 = vpack.c.bf16 %v56_v1, %v55_v0  ;;  %v314_v7 = vld [vmem:[%s1513_s8 + $0x8] sm:$0xff]  ;;  %v316_v11 = vld [vmem:[%s1513_s8 + $0x18] sm:$0xff] }
   0x3   :  { %v313_v6 = vld [vmem:[%s1513_s8] sm:$0xff]  ;;  %966 = vmatprep.mubr.msk.f32.mxu0 %vm64_vm1, %v49_v2  ;;  %v50_v12 = vld [vmem:[%s1506_s1 + $0x8] sm:$0xff]  ;;  %v1058_v13 = vpack.c.bf16 %v316_v11, %v315_v9  ;;  %v51_v14 = vld [vmem:[%s1506_s1 + $0x10] sm:$0xff] }
   0x4   :  { %v1054_v8 = vpack.c.bf16 %v314_v7, %v313_v6  ;;  %1048 = vmatprep.subr.bf16.mxu0 %v1047_v4  ;;  %1053 = vmatpush3.bf16.msra.mxu1 %v1047_v4  ;;  %v230_v10 = vld [vmem:[%s1507_s2] sm:$0xff] }
   0x5   :  { %1050 = vmatpush3.bf16.msra.mxu0 %v1047_v4  ;;  %v307_v15 = vld [vmem:[%s1508_s3] sm:$0xff] }
   0x6   :  { %1055 = vmatprep.subr.bf16.mxu1 %v1054_v8  ;;  %1062 = vmatprep.subr.bf16.mxu0 %v1180_v3 }
   0x7   :  { %980 = vmatmul.mubr.msk.f32.vlgmr.msra.gmra.mrb[0].mxu1 %vm64_vm1, %v230_v10 }
   0x8   :  { %22 = vsyncpa [#allocation6], 0  ;;  %967 = vmatmul.mubr.msk.f32.vlgmr.msra.gmra.mrb[0].mxu0 %vm64_vm1, %v50_v12  ;;  %1057 = vmatpush3.bf16.msra.mxu1 %v1054_v8  ;;  %v52_v16 = vld [vmem:[%s1506_s1 + $0x18] sm:$0xff]  ;;  %v53_v17 = vld [vmem:[%s1506_s1 + $0x20] sm:$0xff]  ;;  %vm504_vm3 = vcmask 392192   ;;  %s1184_s19 = smov 64  }
   0x9   :  { %969 = vmatprep.mubr.msk.f32.mxu0 %vm64_vm1, %v51_v14  ;;  %1059 = vmatprep.subr.bf16.mxu1 %v1058_v13  ;;  %v308_v18 = vld [vmem:[%s1508_s3 + $0x8] sm:$0xff]  ;;  %v309_v20 = vld [vmem:[%s1508_s3 + $0x10] sm:$0xff]  ;;  %v310_v21 = vld [vmem:[%s1508_s3 + $0x18] sm:$0xff]  ;;  %s1185_s20 = smov [#allocation5]  }
   0xa   :  { %990 = vmatprep.mubr.msk.f32.mxu1 %vm178_vm2, %v307_v15  ;;  %v54_v19 = vld [vmem:[%s1506_s1 + $0x28] sm:$0xff]  ;;  %v311_v22 = vld [vmem:[%s1508_s3 + $0x20] sm:$0xff]  ;;  %s872_s21 = sshll.u32 %s1185_s20, 4  ;;  %s873_s21 = int_to_ptr.vmem [resolvable:$true] %s872_s21 }
   0xb   :  { %v312_v23 = vld [vmem:[%s1508_s3 + $0x28] sm:$0xff]  ;;  %v884_v24 = vld [vmem:[%s1512_s7] ss:$0 sm:$0xff]  ;;  %s1132_s6 = scalar_lea.vmem %s873_s21, 128  ;;  %p1137_p1 = scmp.lt.s32.totalorder %s873_s21, %s873_s21 }
   0xc   :  { %970 = vmatmul.mubr.msk.f32.gmra.mrb[2].mxu0 %vm64_vm1, %v52_v16  ;;  %1061 = vmatpush3.bf16.msra.mxu1 %v1058_v13  ;;  %v892_v38 = vld [vmem:[%s1514_s9] ss:$0 sm:$0xff]  ;;  %s1183_s9 = smov 96   ;;  %p1133_p0 = scmp.ne.s32.totalorder %s873_s21, %s1132_s6 }
   0xd   :  { %972 = vmatprep.mubr.msk.f32.mxu0 %vm64_vm1, %v53_v17  ;;  %1077 = vmatprep.subr.bf16.mxu1 %v1180_v3  ;;  %p1138_p2 = scmp.lt.s32.totalorder %s1132_s6, %s1132_s6 }
   0xf   :  { %991 = vmatmul.mubr.msk.f32.vlgmr.msra.gmra.mrb[2].mxu1 %vm178_vm2, %v308_v18  ;;  %p1139_p3 = por %p1138_p2, %p1137_p1 }
  0x10   :  { %973 = vmatmul.mubr.msk.f32.gmra.mrb[4].mxu0 %vm64_vm1, %v54_v19  ;;  %993 = vmatprep.mubr.msk.f32.mxu1 %vm178_vm2, %v309_v20 }
  0x11   :  { %1011 = vmatprep.mubr.msk.f32.mxu0 %vm1181_vm0, %v1182_v5  ;;  %p1140_p4 = pnand %p1139_p3, %p1133_p0 }
  0x13   :  { %994 = vmatmul.mubr.msk.f32.gmra.mrb[4].mxu1 %vm178_vm2, %v310_v21 }
  0x14   :  { %996 = vmatprep.mubr.msk.f32.mxu1 %vm178_vm2, %v311_v22 }
  0x17   :  { %997 = vmatmul.mubr.msk.f32.gmra.mrb[6].mxu1 %vm178_vm2, %v312_v23 }
  0x18   :  { %1033 = vmatprep.mubr.msk.f32.mxu1 %vm1181_vm0, %v1182_v5 }
  0xda   :  { %v300_v25 = vpop.f32.mrb[0].mxu1 }
  0xdb   :  { %v1344_v26 = vadd.f32 %v884_v24, %v300_v25  ;;  %v981_v27 = vpop.f32.mrb[1].mxu1  ;;  %v968_v28 = vpop.f32.mrb[0].mxu0 }
  0xdc   :  { %v1346_v29 = vadd.f32 %v968_v28, %v884_v24  ;;  %v149_v30 = vpop.f32.mrb[1].mxu0 }
  0xdd   :  { %v1348_v31 = vadd.f32 %v884_v24, %v149_v30 }
  0xde   :  { %v180_v32 = vsel %vm178_vm2, %v1346_v29, 0.0 }
  0xdf   :  { %v179_v33 = vsel %vm178_vm2, %v1348_v31, 0.0  ;;  %v971_v34 = vpop.f32.mrb[2].mxu0 }
  0xe0   :  { %v181_v35 = vadd.f32 %v180_v32, %v179_v33  ;;  %v1354_v36 = vadd.f32 %v971_v34, %v884_v24  ;;  %v159_v37 = vpop.f32.mrb[3].mxu0 }
  0xe1   :  { %v160_v39 = vadd.f32 %v884_v24, %v159_v37 }
  0xe2   :  { %v992_v40 = vpop.f32.mrb[2].mxu1  ;;  %v184_v41 = vsel %vm178_vm2, %v1354_v36, 0.0 }
  0xe3   :  { %v182_v42 = vsel %vm178_vm2, %v160_v39, 0.0  ;;  %v1362_v43 = vadd.f32 %v992_v40, %v892_v38  ;;  %v974_v44 = vpop.f32.mrb[4].mxu0  ;;  %v408_v45 = vpop.f32.mrb[3].mxu1 }
  0xe4   :  { %v183_v46 = vadd.f32 %v182_v42, %v181_v35  ;;  %v175_v47 = vadd.f32 %v974_v44, %v884_v24  ;;  %v1364_v48 = vadd.f32 %v892_v38, %v408_v45  ;;  %v169_v49 = vpop.f32.mrb[5].mxu0 }
  0xe5   :  { %v900_v50 = vmul.f32 -1.442695, %v1362_v43  ;;  %v170_v51 = vadd.f32 %v884_v24, %v169_v49 }
  0xe6   :  { %v899_v52 = vmul.f32 -1.442695, %v1364_v48  ;;  %v185_v53 = vadd.f32 %v184_v41, %v183_v46  ;;  %v995_v54 = vpop.f32.mrb[4].mxu1  ;;  %v188_v55 = vsel %vm178_vm2, %v175_v47, 0.0 }
  0xe7   :  { %1096 = vpow2.f32 %v900_v50  ;;  %v186_v56 = vsel %vm178_vm2, %v170_v51, 0.0  ;;  %v1370_v57 = vadd.f32 %v995_v54, %v892_v38  ;;  %v418_v58 = vpop.f32.mrb[5].mxu1 }
  0xe8   :  { %1098 = vpow2.f32 %v899_v52  ;;  %v187_v59 = vadd.f32 %v186_v56, %v185_v53  ;;  %v1372_v60 = vadd.f32 %v892_v38, %v418_v58  ;;  %v580_v56 = vld [vmem:[%s1515_s10] sm:$0xff] }
  0xe9   :  { %v902_v61 = vmul.f32 -1.442695, %v1370_v57 }
  0xea   :  { %v189_v62 = vadd.f32 %v188_v55, %v187_v59  ;;  %v901_v63 = vmul.f32 -1.442695, %v1372_v60  ;;  %v998_v0 = vpop.f32.mrb[6].mxu1  ;;  %v581_v59 = vld [vmem:[%s1515_s10 + $0x8] sm:$0xff] }
  0xeb   :  { %1100 = vpow2.f32 %v902_v61  ;;  %v1376_v1 = vadd.f32 %v998_v0, %v892_v38  ;;  %v428_v2 = vpop.f32.mrb[7].mxu1 }
  0xec   :  { %v190_v4 = vrot.slane %v189_v62, 4  ;;  %1102 = vpow2.f32 %v901_v63  ;;  %v1378_v6 = vadd.f32 %v892_v38, %v428_v2  ;;  %v582_v2 = vld [vmem:[%s1515_s10 + $0x10] sm:$0xff] }
  0xed   :  { %v904_v7 = vmul.f32 -1.442695, %v1376_v1 }
  0xee   :  { %v191_v8 = vadd.f32 %v190_v4, %v189_v62  ;;  %v903_v9 = vmul.f32 -1.442695, %v1378_v6  ;;  %v1078_v62 = vpack.c.bf16 %v581_v59, %v580_v56  ;;  %v583_v4 = vld [vmem:[%s1515_s10 + $0x18] sm:$0xff] }
  0xef   :  { %1104 = vpow2.f32 %v904_v7 }
  0xf0   :  { %v192_v10 = vrot.slane %v191_v8, 2  ;;  %1106 = vpow2.f32 %v903_v9  ;;  %1079 = vmatpush3.bf16.msra.mxu1 %v1078_v62 }
  0xf1   :  { %v1097_v11 = vpop.eup %1096  ;;  %1080 = vmatprep.subr.bf16.mxu1 %v1180_v3 }
  0xf2   :  { %v1099_v12 = vpop.eup %1098  ;;  %v193_v13 = vadd.f32 %v192_v10, %v191_v8  ;;  %v456_v14 = vadd.f32 1.0, %v1097_v11  ;;  %v1081_v8 = vpack.c.bf16 %v583_v4, %v582_v2  ;;  %v579_v10 = vld [vmem:[%s1509_s4] sm:$0xff] }
  0xf3   :  { %v455_v15 = vadd.f32 1.0, %v1099_v12 }
  0xf4   :  { %v194_v16 = vrot.slane %v193_v13, 1  ;;  %1082 = vmatpush3.bf16.msra.mxu1 %v1081_v8 }
  0xf5   :  { %v1101_v17 = vpop.eup %1100  ;;  %1108 = vrcp.f32 %v455_v15 }
  0xf6   :  { %v1103_v18 = vpop.eup %1102  ;;  %v195_v19 = vadd.f32 %v194_v16, %v193_v13  ;;  %v458_v20 = vadd.f32 1.0, %v1101_v17  ;;  %1110 = vrcp.f32 %v456_v14 }
  0xf7   :  { %v457_v21 = vadd.f32 1.0, %v1103_v18  ;;  %1034 = vmatmul.mubr.msk.f32.vlgmr.msra.gmra.mrb[8].mxu1 %vm178_vm2, %v579_v10 }
  0xf8   :  { %v1382_v22 = vmul.f32 0.020833334, %v195_v19  ;;  %1112 = vrcp.f32 %v458_v20 }
  0xf9   :  { %v1105_v23 = vpop.eup %1104  ;;  %1114 = vrcp.f32 %v457_v21 }
  0xfa   :  { %v1107_v24 = vpop.eup %1106  ;;  %v198_v25 = vsub.f32 %v1348_v31, %v1382_v22  ;;  %v199_v27 = vsub.f32 %v1346_v29, %v1382_v22  ;;  %v200_v28 = vsub.f32 %v160_v39, %v1382_v22  ;;  %v201_v30 = vsub.f32 %v1354_v36, %v1382_v22 }
  0xfb   :  { %v202_v32 = vsub.f32 %v170_v51, %v1382_v22  ;;  %v203_v33 = vsub.f32 %v175_v47, %v1382_v22  ;;  %v304_v34 = vsub.f32 %v1344_v26, %v1382_v22  ;;  %v460_v35 = vadd.f32 1.0, %v1105_v23 }
  0xfc   :  { %v204_v37 = vmul.f32 %v198_v25, %v198_v25  ;;  %v205_v38 = vmul.f32 %v199_v27, %v199_v27  ;;  %v206_v40 = vmul.f32 %v200_v28, %v200_v28  ;;  %v207_v31 = vmul.f32 %v201_v30, %v201_v30 }
  0xfd   :  { %v208_v41 = vmul.f32 %v202_v32, %v202_v32  ;;  %v459_v42 = vadd.f32 1.0, %v1107_v24  ;;  %1116 = vrcp.f32 %v460_v35  ;;  %v209_v46 = vmul.f32 %v203_v33, %v203_v33  ;;  %v909_v35 = vld [vmem:[%s1515_s10 + $0x38] sm:$0xff] }
  0xfe   :  { %v210_v29 = vsel %vm178_vm2, %v204_v37, 0.0  ;;  %v211_v39 = vsel %vm178_vm2, %v205_v38, 0.0  ;;  %v213_v36 = vsel %vm178_vm2, %v206_v40, 0.0  ;;  %v215_v26 = vsel %vm178_vm2, %v207_v31, 0.0  ;;  %v912_v38 = vld [vmem:[%s1515_s10 + $0x40] sm:$0xff]  ;;  %v913_v40 = vld [vmem:[%s1515_s10 + $0x48] sm:$0xff] }
  0xff   :  { %v1109_v44 = vpop.eup %1108  ;;  %v212_v45 = vadd.f32 %v211_v39, %v210_v29  ;;  %1118 = vrcp.f32 %v459_v42  ;;  %v217_v51 = vsel %vm178_vm2, %v208_v41, 0.0  ;;  %v219_v54 = vsel %vm178_vm2, %v209_v46, 0.0  ;;  %v914_v41 = vld [vmem:[%s1515_s10 + $0x50] sm:$0xff]  ;;  %v915_v42 = vld [vmem:[%s1515_s10 + $0x58] sm:$0xff] }
 0x100   :  { %479 = vrot.lane.b32.xlu0 %v1109_v44, %s1183_s9  ;;  %v1111_v47 = vpop.eup %1110  ;;  %v1084_v31 = vpack.c.bf16 %v913_v40, %v912_v38  ;;  %v1087_v39 = vpack.c.bf16 %v915_v42, %v914_v41 }
 0x101   :  { %v214_v49 = vadd.f32 %v213_v36, %v212_v45 }
 0x102   :  { %v1113_v50 = vpop.eup %1112 }
 0x103   :  { %v1115_v52 = vpop.eup %1114  ;;  %v216_v53 = vadd.f32 %v215_v26, %v214_v49  ;;  %485 = vrot.lane.b32.xlu1 %v1113_v50, %s1183_s9 }
 0x104   :  { %481 = vrot.lane.b32.xlu0 %v1111_v47, %s1183_s9 }
 0x105   :  { %v218_v55 = vadd.f32 %v217_v51, %v216_v53  ;;  %v917_v51 = vld [vmem:[%s1516_s11] ss:$0 sm:$0xff] }
 0x107   :  { %v220_v58 = vadd.f32 %v219_v54, %v218_v55  ;;  %483 = vrot.lane.b32.xlu1 %v1115_v52, %s1183_s9  ;;  %v1117_v61 = vpop.eup %1116 }
 0x109   :  { %v1119_v63 = vpop.eup %1118  ;;  %v221_v0 = vrot.slane %v220_v58, 4 }
 0x10a   :  { %487 = vrot.lane.b32.xlu0 %v1119_v63, %s1183_s9 }
 0x10b   :  { %v222_v7 = vadd.f32 %v221_v0, %v220_v58  ;;  %489 = vrot.lane.b32.xlu1 %v1117_v61, %s1183_s9 }
 0x10d   :  { %v223_v9 = vrot.slane %v222_v7, 2 }
 0x10f   :  { %v224_v11 = vadd.f32 %v223_v9, %v222_v7 }
 0x111   :  { %v225_v12 = vrot.slane %v224_v11, 1 }
 0x113   :  { %v226_v13 = vadd.f32 %v225_v12, %v224_v11 }
 0x115   :  { %v227_v14 = vmul.f32 0.020833334, %v226_v13 }
 0x117   :  { %v228_v15 = vadd.f32 1e-05, %v227_v14 }
 0x119   :  { %1120 = vrsqrt.f32 %v228_v15 }
 0x123   :  { %v1121_v16 = vpop.eup %1120 }
 0x124   :  { %v305_v17 = vmul.f32 %v1121_v16, %v304_v34 }
 0x126   :  { %1122 = vtanh.f32 %v305_v17 }
 0x130   :  { %v1123_v29 = vpop.eup %1122 }
 0x172   :  { %v480_v18 = vpop.permute.xlu0 %479 }
 0x173   :  { %v497_v21 = vmul.f32 %v480_v18, %v1364_v48 }
 0x175   :  { %v486_v19 = vpop.permute.xlu1 %485 }
 0x176   :  { %v482_v20 = vpop.permute.xlu0 %481  ;;  %v500_v25 = vmul.f32 %v486_v19, %v1370_v57  ;;  %v907_v57 = vld [vmem:[%s1515_s10 + $0x28] sm:$0xff] }
 0x177   :  { %v498_v22 = vmul.f32 %v482_v20, %v1362_v43  ;;  %v906_v43 = vld [vmem:[%s1515_s10 + $0x20] sm:$0xff] }
 0x179   :  { %v1063_v23 = vpack.c.bf16 %v498_v22, %v497_v21  ;;  %v484_v24 = vpop.permute.xlu1 %483 }
 0x17a   :  { %v499_v27 = vmul.f32 %v484_v24, %v1372_v60  ;;  %v503_v60 = vld [vmem:[%s1510_s5] sm:$0xff] }
 0x17b   :  { %1064 = vmatpush3.bf16.msra.mxu0 %v1063_v23 }
 0x17c   :  { %v1066_v28 = vpack.c.bf16 %v500_v25, %v499_v27  ;;  %v488_v30 = vpop.permute.xlu0 %487  ;;  %1065 = vmatprep.subr.bf16.mxu0 %v1180_v3 }
 0x17d   :  { %v490_v32 = vpop.permute.xlu1 %489  ;;  %v501_v33 = vmul.f32 %v488_v30, %v1378_v6  ;;  %v908_v6 = vld [vmem:[%s1515_s10 + $0x30] sm:$0xff] }
 0x17e   :  { %v502_v34 = vmul.f32 %v490_v32, %v1376_v1  ;;  %v1072_v1 = vpack.c.bf16 %v907_v57, %v906_v43  ;;  %v1075_v37 = vpack.c.bf16 %v909_v35, %v908_v6 }
 0x17f   :  { %1067 = vmatpush3.bf16.msra.mxu0 %v1066_v28 }
 0x180   :  { %v1069_v48 = vpack.c.bf16 %v502_v34, %v501_v33  ;;  %1068 = vmatprep.subr.bf16.mxu0 %v1180_v3 }
 0x183   :  { %1070 = vmatpush3.bf16.msra.mxu0 %v1069_v48 }
 0x184   :  { %1071 = vmatprep.subr.bf16.mxu0 %v1180_v3 }
 0x186   :  { %1012 = vmatmul.mubr.msk.f32.vlgmr.msra.gmra.mrb[6].mxu0 %vm504_vm3, %v503_v60 }
 0x187   :  { %1073 = vmatpush3.bf16.msra.mxu0 %v1072_v1  ;;  %1022 = vmatprep.mubr.msk.f32.mxu0 %vm1181_vm0, %v1182_v5 }
 0x188   :  { %1074 = vmatprep.subr.bf16.mxu0 %v1180_v3 }
 0x18b   :  { %1076 = vmatpush3.bf16.msra.mxu0 %v1075_v37 }
 0x18c   :  { %1083 = vmatprep.subr.bf16.mxu0 %v1180_v3 }
 0x18e   :  { %1023 = vmatmul.mubr.msk.f32.vlgmr.msra.gmra.mrb[8].mxu0 %vm178_vm2, %v1123_v29 }
 0x18f   :  { %1085 = vmatpush3.bf16.msra.mxu0 %v1084_v31  ;;  %1044 = vmatprep.mubr.msk.f32.mxu0 %vm1181_vm0, %v1182_v5 }
 0x190   :  { %1086 = vmatprep.subr.bf16.mxu0 %v1180_v3 }
 0x193   :  { %1088 = vmatpush3.bf16.msra.mxu0 %v1087_v39 }
 0x1ca   :  { %v731_v36 = vpop.f32.mrb[8].mxu1 }
 0x1cb   :  { %v1035_v44 = vpop.f32.mrb[9].mxu1 }
 0x259   :  { %v574_v45 = vpop.f32.mrb[6].mxu0 }
 0x25a   :  { %578 = vst.msk [vmem:[#allocation5] sm:$0xff] %vm178_vm2, %v574_v45  ;;  %v1013_v46 = vpop.f32.mrb[7].mxu0  ;;  %1045 = vmatmul.mubr.msk.f32.vlgmr.msra.gmra.mrb[10].mxu0 %vm178_vm2, %v574_v45 }
 0x261   :  { %v658_v26 = vpop.f32.mrb[8].mxu0 }
 0x262   :  { %v732_v47 = vadd.f32 %v731_v36, %v658_v26  ;;  %v1024_v49 = vpop.f32.mrb[9].mxu0 }
 0x32d   :  { %v809_v50 = vpop.f32.mrb[10].mxu0 }
 0x32e   :  { %v813_v5 = vadd.f32 %v809_v50, %v732_v47  ;;  %v1046_v52 = vpop.f32.mrb[11].mxu0 }
 0x330   :  { %v821_v3 = vadd.f32 %v917_v51, %v813_v5 }
 0x332   :  { %v918_v53 = vmul.f32 -1.442695, %v821_v3 }
 0x334   :  { %1124 = vpow2.f32 %v918_v53 }
 0x33e   :  { %v1125_v54 = vpop.eup %1124 }
 0x33f   :  { %v841_v55 = vadd.f32 1.0, %v1125_v54 }
 0x341   :  { %1126 = vrcp.f32 %v841_v55 }
 0x34b   :  { %v1127_v56 = vpop.eup %1126 }
 0x34c   :  { %845 = vrot.lane.b32.xlu0 %v1127_v56, %s1184_s19 }
 0x34d   :  { %1143 = shalt.err (!%p1140_p4)
}
 0x34e   :  { %s1144_s4 = scalar_lea.hbm %s1519_s14, 128 }
 0x34f   :  { %p1145_p5 = scmp.ne.s32.totalorder %s1519_s14, %s1144_s4  ;;  %p1148_p6 = scmp.lt.u32.totalorder %s1144_s4, %s1519_s14 }
 0x351   :  { %p1150_p7 = pnand %p1148_p6, %p1145_p5 }
 0x353   :  { %1153 = shalt.err (!%p1150_p7)
}
 0x354   :  { %875 = dma.vmem_to_hbm [thread:$0]  %s873_s21, 128, %s1519_s14, [#allocation6]   ;;  %v824_v61 = vld [vmem:[%s1517_s12] sm:$0x1]  ;;  %v832_v7 = vlaneseq }
 0x355   :  { %v825_v62 = vadd.f32 1e-10, %v824_v61  ;;  %s823_s15 = ssub.f32 0.0, %s1505_s0  ;;  %s1186_s14 = smov [#allocation3]  }
 0x356   :  { %v833_v8 = vshrl.u32 %v832_v7, 7 }
 0x357   :  { %1128 = vrcp.f32 %v825_v62  ;;  %v826_v0 = vstv %s823_s15 }
 0x358   :  { %v834_v9 = vsub.s32 0, %v833_v8 }
 0x361   :  { %v1129_v63 = vpop.eup %1128 }
 0x362   :  { %v828_v2 = vmul.f32 %v1129_v63, %v826_v0 }
 0x364   :  { %v829_v4 = vmul.f32 1.442695, %v828_v2 }
 0x366   :  { %1130 = vpow2.f32 %v829_v4 }
 0x370   :  { %v1131_v10 = vpop.eup %1130 }
 0x371   :  { %v835_v11 = vrot.slane %v1131_v10, %v834_v9 }
 0x373   :  { %v837_v12 = vmul.f32 %v835_v11, %v821_v3 }
 0x3be   :  { %v846_v58 = vpop.permute.xlu0 %845 }
 0x3bf   :  { %v849_v59 = vmul.f32 %v846_v58, %v821_v3  ;;  %v848_v13 = vmul.f32 %v846_v58, %v837_v12 }
 0x3c1   :  { %851 = vrot.lane.b32.xlu1 %v849_v59, %s1183_s9  ;;  %s862_s9 = sshll.u32 %s1186_s14, 4  ;;  %s863_s9 = int_to_ptr.vmem [resolvable:$true] %s862_s9 }
 0x3c2   :  { %s1154_s0 = scalar_lea.vmem %s863_s9, 128  ;;  %p1159_p9 = scmp.lt.s32.totalorder %s863_s9, %s863_s9 }
 0x3c3   :  { %p1155_p8 = scmp.ne.s32.totalorder %s863_s9, %s1154_s0  ;;  %p1160_p10 = scmp.lt.s32.totalorder %s1154_s0, %s1154_s0 }
 0x3c5   :  { %p1161_p11 = por %p1160_p10, %p1159_p9 }
 0x3c7   :  { %p1162_p12 = pnand %p1161_p11, %p1155_p8 }
 0x433   :  { %v852_v14 = vpop.permute.xlu1 %851 }
 0x434   :  { %v854_v15 = vadd.f32 %v852_v14, %v848_v13 }
 0x436   :  { %855 = vst.msk [vmem:[#allocation3] sm:$0xff] %vm178_vm2, %v854_v15 }
 0x437   :  { %1165 = shalt.err (!%p1162_p12)
}
 0x438   :  { %s1166_s7 = scalar_lea.hbm %s1518_s13, 128 }
 0x439   :  { %p1167_p13 = scmp.ne.s32.totalorder %s1518_s13, %s1166_s7  ;;  %p1170_p0 = scmp.lt.u32.totalorder %s1166_s7, %s1518_s13 }
 0x43b   :  { %p1172_p1 = pnand %p1170_p0, %p1167_p13 }
 0x43d   :  { %1175 = shalt.err (!%p1172_p1)
}
 0x43e   :  { %865 = dma.vmem_to_hbm [thread:$0]  %s863_s9, 128, %s1518_s13, [#allocation4]  }
 0x43f   :  { %1176 = dma.done.wait [#allocation4], 128  }
 0x440   :  { %1177 = vsyncadd [#allocation4], 4294967168 }
 0x441   :  { %1178 = dma.done.wait [#allocation6], 128  }
 0x442   :  { %1179 = vsyncadd [#allocation6], 4294967168 }
 0x443   :  { %882 = vsyncpa [#allocation4], 1 }
 0x444   :  { %883 = vsyncpa [#allocation6], 1 }

</bundles_post_ra>
